<compile_context>
chip_gen: v5e
topology: v5e:2x2
jax: 0.10.0
libtpu: 0.0.40
codegen_flags: <defaults>
</compile_context>

<pallas_src>
import functools

import jax
import jax.numpy as jnp
from jax.experimental import pallas as pl
from jax.experimental.pallas import tpu as pltpu


# ---------------------------------------------------------------------------
# Tiling policy
# ---------------------------------------------------------------------------
_LANE_CAP = 16 * 1024             # max lanes per block (multiple of 128)
_ROW_CAP = 512                    # max sublane rows per block
_BLOCK_BUDGET = 4 * 1024 * 1024   # bytes of (in + out) per block (pre double-buffer)
_STATS_RESIDENT_CAP = 8 * 1024 * 1024  # max bytes for fully resident stats (2 bufs)


def _sublane_min(*dtypes):
    """Min sublane rows so packed dtypes get full vregs / unmasked stores."""
    m = 8
    for dt in dtypes:
        size = jnp.dtype(dt).itemsize
        if size == 1:
            m = max(m, 32)
        elif size == 2:
            m = max(m, 16)
    return m


def _pick_dividing_tile(dim, unit, cap):
    """Largest t <= cap with unit | t and t | dim; full `dim` if dim <= cap;
    None if nothing divides (caller falls back to a cdiv/padded grid)."""
    if dim <= cap:
        return dim                       # full extent is always a legal block dim
    t = (cap // unit) * unit
    while t >= unit:
        if dim % t == 0:
            return t
        t -= unit
    return None


def _plan_tiles(rows, cols, in_bytes, out_bytes, sub_min):
    """Pick (TR, TC) for a (rows, cols) slab under the byte budget."""
    tc = _pick_dividing_tile(cols, 128, _LANE_CAP)
    if tc is None:
        tc = _LANE_CAP                   # non-dividing: Pallas pads/masks edge block
    row_bytes = tc * (in_bytes + out_bytes)
    row_cap = max(sub_min,
                  min(_ROW_CAP, (_BLOCK_BUDGET // row_bytes) // sub_min * sub_min))
    tr = _pick_dividing_tile(rows, sub_min, row_cap)
    if tr is None:
        tr = row_cap                     # non-dividing: padded edge block
    return tr, tc


def _vmem_limit(need_bytes):
    """Explicit scoped-VMEM budget (working set + headroom, capped for v7x)."""
    return int(min(max(need_bytes + (4 << 20), 12 << 20), 48 << 20))


# ---------------------------------------------------------------------------
# Kernels (VPU elementwise; the op is HBM-bandwidth limited)
# ---------------------------------------------------------------------------
def _to_f32(x):
    # Widen integer (e.g. uint8) inputs via int32 before the float convert so
    # the lowering stays on the well-supported extend + sitofp path.
    if jnp.issubdtype(x.dtype, jnp.integer):
        x = x.astype(jnp.int32)
    return x.astype(jnp.float32)


def _scale_kernel(x_ref, o_ref, *, inv_scale):
    # x * (1/ob_scale)  -- multiply instead of a per-element divide.
    o_ref[...] = (_to_f32(x_ref[...]) * inv_scale).astype(o_ref.dtype)


def _affine_kernel(x_ref, sb_ref, o_ref, *, feat_axis, tf, stats_resident):
    # out = x * scale + bias  with scale = 1/std, bias = -mean/std (hoisted).
    if stats_resident:
        # sb_ref holds the full (2, F) stats slab, resident across the grid;
        # slice out this block's feature window (lane-aligned -> cheap).
        off = pl.program_id(feat_axis) * tf
        if tf % 128 == 0:
            off = pl.multiple_of(off, 128)
        sb = sb_ref[:, pl.ds(off, tf)]
    else:
        sb = sb_ref[...]                 # (2, TF) tile DMA'd per feature tile
    x = _to_f32(x_ref[...])
    o_ref[...] = (x * sb[0:1, :] + sb[1:2, :]).astype(o_ref.dtype)


# ---------------------------------------------------------------------------
# Wrapper (mirrors the PyTorch module)
# ---------------------------------------------------------------------------
class ImgPreprocessing:
    """Normalize incoming images.

    If `img_mean`/`img_std` are given (stand-in for the npz statistics file),
    normalize with them; otherwise scale by 1/255 (or identity if
    scale_img=False).  `out_dtype` may be set to bfloat16 to halve output HBM
    traffic when the downstream encoder is bf16.
    """

    def __init__(self, img_mean=None, img_std=None, scale_img: bool = True,
                 out_dtype=jnp.float32):
        # TODO(synk): the PyTorch module loads mean/std from an npz path; file
        # I/O has no Pallas equivalent, so statistics are passed in as arrays.
        self.out_dtype = out_dtype
        self.scale_bias = None
        self.inv_scale = None
        if img_mean is not None:
            assert img_std is not None
            mean = jnp.asarray(img_mean, jnp.float32)       # (C, H, W)
            std = jnp.asarray(img_std, jnp.float32)         # (C, H, W)
            scale = 1.0 / std                                # hoist the divide
            bias = -mean * scale
            # Fused (2, F) slab: row 0 = scale, row 1 = bias (single resident DMA).
            self.scale_bias = jnp.stack(
                [scale.reshape(-1), bias.reshape(-1)], axis=0)
        else:
            self.inv_scale = (1.0 / 255.0) if scale_img else 1.0

    def __call__(self, img):
        B = img.shape[0]
        F_ = 1
        for d in img.shape[1:]:
            F_ *= d
        out_dtype = self.out_dtype

        # ---- no-op fast path: skip the HBM round trip entirely -------------
        if self.scale_bias is None and self.inv_scale == 1.0:
            return img if img.dtype == out_dtype else img.astype(out_dtype)

        in_b = jnp.dtype(img.dtype).itemsize
        out_b = jnp.dtype(out_dtype).itemsize
        sub_min = _sublane_min(img.dtype, out_dtype)
        cparams = dict(dimension_semantics=("parallel", "parallel"))

        if self.scale_bias is None:
            # ---- scale path: pure elementwise, free to pick a lane-dense view
            N = B * F_
            R, C = B, F_
            cap = min(_LANE_CAP, max(128, ((N // sub_min) // 128) * 128))
            if N % 128 == 0:
                t = cap
                while t >= 128:
                    if N % t == 0:
                        R, C = N // t, t
                        break
                    t -= 128
            x2d = img.reshape(R, C)
            TR, TC = _plan_tiles(R, C, in_b, out_b, sub_min)
            nr, nc = pl.cdiv(R, TR), pl.cdiv(C, TC)
            if nc >= nr:                                   # larger extent outermost
                grid = (nc, nr)
                x_map = lambda jc, ir: (ir, jc)
            else:
                grid = (nr, nc)
                x_map = lambda ir, jc: (ir, jc)
            block = pl.BlockSpec((TR, TC), x_map)
            vmem_need = 2 * TR * TC * (in_b + out_b)       # double-buffered in+out
            out2d = pl.pallas_call(
                functools.partial(_scale_kernel, inv_scale=float(self.inv_scale)),
                out_shape=jax.ShapeDtypeStruct((R, C), out_dtype),
                grid=grid,
                in_specs=[block],
                out_specs=block,
                compiler_params=pltpu.CompilerParams(
                    vmem_limit_bytes=_vmem_limit(vmem_need), **cparams),
            )(x2d)
            return out2d.reshape(img.shape)

        # ---- statistics path: (B, F) slab, per-feature affine ---------------
        sb = self.scale_bias                               # (2, F_)
        assert sb.shape[1] == F_, "image spatial shape must match the statistics"
        x2d = img.reshape(B, F_)
        # NOTE: for B < 8 the x blocks are sublane-sparse; folding C into the
        # sublane axis would fix that but the absolute data volume is tiny.
        TR, TC = _plan_tiles(B, F_, in_b, out_b, sub_min)
        nr, nc = pl.cdiv(B, TR), pl.cdiv(F_, TC)
        # Keep the full stats slab VMEM-resident when it is small and every
        # feature tile is full-width (otherwise fall back to per-tile stats,
        # where Pallas clamps the edge DMA).
        stats_resident = (2 * 2 * F_ * 4 <= _STATS_RESIDENT_CAP) and (F_ % TC == 0)
        if nc >= nr:                                       # larger extent outermost
            grid = (nc, nr)
            x_map = lambda jc, ir: (ir, jc)
            stat_map = (lambda jc, ir: (0, 0)) if stats_resident else (lambda jc, ir: (0, jc))
            feat_axis = 0
        else:
            grid = (nr, nc)
            x_map = lambda ir, jc: (ir, jc)
            stat_map = (lambda ir, jc: (0, 0)) if stats_resident else (lambda ir, jc: (0, jc))
            feat_axis = 1
        x_spec = pl.BlockSpec((TR, TC), x_map)
        out_spec = pl.BlockSpec((TR, TC), x_map)
        sb_spec = pl.BlockSpec((2, F_ if stats_resident else TC), stat_map)
        stats_bytes = 2 * 2 * (F_ if stats_resident else TC) * 4
        vmem_need = 2 * TR * TC * (in_b + out_b) + stats_bytes
        out2d = pl.pallas_call(
            functools.partial(_affine_kernel, feat_axis=feat_axis, tf=TC,
                              stats_resident=stats_resident),
            out_shape=jax.ShapeDtypeStruct((B, F_), out_dtype),
            grid=grid,
            in_specs=[x_spec, sb_spec],
            out_specs=out_spec,
            compiler_params=pltpu.CompilerParams(
                vmem_limit_bytes=_vmem_limit(vmem_need), **cparams),
        )(x2d, sb)
        return out2d.reshape(img.shape)


# ---------------------------------------------------------------------------
# Main
# ---------------------------------------------------------------------------
if __name__ == "__main__":
    key = jax.random.PRNGKey(0)
    keys = jax.random.split(key, 8)

    # ---- T1/T2/T3: small spec shape (B, C, H, W) = (2, 4, 16, 16), f32 ----
    B, C, H, W = 2, 4, 16, 16
    img = jax.random.uniform(keys[0], (B, C, H, W), jnp.float32, 0.0, 255.0)

    # scale path (1/255)
    out_scale = jax.block_until_ready(ImgPreprocessing(scale_img=True)(img))
    assert out_scale.shape == (B, C, H, W)
    assert jnp.allclose(out_scale, img / 255.0, atol=1e-6, rtol=1e-6)

    # statistics path (tolerance loosened for the x*scale+bias refactor, ~1 ulp/elem)
    img_mean = jax.random.uniform(keys[1], (C, H, W), jnp.float32, 0.0, 255.0)
    img_std = jax.random.uniform(keys[2], (C, H, W), jnp.float32, 1.0, 64.0)
    out_stats = jax.block_until_ready(
        ImgPreprocessing(img_mean=img_mean, img_std=img_std)(img))
    ref_stats = (img - img_mean[None]) / img_std[None]
    assert out_stats.shape == (B, C, H, W)
    assert jnp.allclose(out_stats, ref_stats, atol=1e-4, rtol=1e-5)

    # identity fast path (no stats, scale_img=False): no kernel launch
    out_id = ImgPreprocessing(scale_img=False)(img)
    assert out_id.dtype == img.dtype and jnp.array_equal(out_id, img)

    # ---- T4: larger f32 shape exercising multi-tile grids + resident-stats
    #          feature slicing (F_ = 3*96*96 = 27648 > one lane-tile) ----
    B2, C2, H2, W2 = 16, 3, 96, 96
    img2 = jax.random.uniform(keys[3], (B2, C2, H2, W2), jnp.float32, 0.0, 255.0)
    mean2 = jax.random.uniform(keys[4], (C2, H2, W2), jnp.float32, 0.0, 255.0)
    std2 = jax.random.uniform(keys[5], (C2, H2, W2), jnp.float32, 1.0, 64.0)

    out2_scale = jax.block_until_ready(ImgPreprocessing(scale_img=True)(img2))
    assert jnp.allclose(out2_scale, img2 / 255.0, atol=1e-6, rtol=1e-6)

    out2_stats = jax.block_until_ready(
        ImgPreprocessing(img_mean=mean2, img_std=std2)(img2))
    ref2_stats = (img2 - mean2[None]) / std2[None]
    assert out2_stats.shape == (B2, C2, H2, W2)
    assert jnp.allclose(out2_stats, ref2_stats, atol=1e-4, rtol=1e-5)

    # ---- T5: uint8 input / bfloat16 output (3 bytes/elem HBM path) ----
    B3, C3, H3, W3 = 32, 3, 32, 32
    img3_u8 = jax.random.randint(keys[6], (B3, C3, H3, W3), 0, 256,
                                 dtype=jnp.int32).astype(jnp.uint8)
    mean3 = jax.random.uniform(keys[7], (C3, H3, W3), jnp.float32, 0.0, 255.0)
    std3 = jnp.full((C3, H3, W3), 32.0, jnp.float32) + mean3 / 255.0

    out3_scale = jax.block_until_ready(ImgPreprocessing(scale_img=True)(img3_u8))
    assert out3_scale.dtype == jnp.float32
    assert jnp.allclose(out3_scale, img3_u8.astype(jnp.float32) / 255.0,
                        atol=1e-6, rtol=1e-6)

    out3_stats = jax.block_until_ready(
        ImgPreprocessing(img_mean=mean3, img_std=std3,
                         out_dtype=jnp.bfloat16)(img3_u8))
    assert out3_stats.dtype == jnp.bfloat16
    ref3 = (img3_u8.astype(jnp.float32) - mean3[None]) / std3[None]
    assert jnp.allclose(out3_stats.astype(jnp.float32), ref3,
                        atol=1e-2, rtol=1e-2)   # bf16 output rounding

    print("KERNEL_OK")
</pallas_src>

<mosaic_0001>
module attributes {stable_mosaic.version = 11 : i64} {
  func.func @_scale_kernel(%arg0: i32, %arg1: i32, %arg2: memref<8x256xf32, #tpu.memory_space<vmem>>, %arg3: memref<8x256xf32, #tpu.memory_space<vmem>>) attributes {dimension_semantics = [#tpu.dimension_semantics<parallel>, #tpu.dimension_semantics<parallel>], iteration_bounds = array<i64: 1, 1>, scalar_prefetch = 0 : i64, scratch_operands = 0 : i64, tpu.core_type = #tpu.core_type<tc>, window_params = [{transform_indices = @transform_0, window_bounds = array<i64: 8, 256>}, {transform_indices = @transform_1, window_bounds = array<i64: 8, 256>}]} {
    %c0 = arith.constant 0 : index
    %c0_0 = arith.constant 0 : index
    %0 = vector.load %arg2[%c0, %c0_0] : memref<8x256xf32, #tpu.memory_space<vmem>>, vector<8x256xf32>
    %cst = arith.constant 0.00392156886 : f32
    %1 = vector.broadcast %cst : f32 to vector<8x256xf32>
    %2 = arith.mulf %0, %1 : vector<8x256xf32>
    %c0_1 = arith.constant 0 : index
    %c0_2 = arith.constant 0 : index
    %3 = vector.load %arg3[%c0_1, %c0_2] : memref<8x256xf32, #tpu.memory_space<vmem>>, vector<8x256xf32>
    tpu.vector_store %arg3[%c0_1, %c0_2], %2 {strides = array<i32>} : memref<8x256xf32, #tpu.memory_space<vmem>>, vector<8x256xf32>,
    return
  }
  func.func @transform_0(%arg0: i32, %arg1: i32) -> (i32, i32) {
    %c0_i32 = arith.constant 0 : i32
    return %arg1, %arg0 : i32, i32
  }
  func.func @transform_1(%arg0: i32, %arg1: i32) -> (i32, i32) {
    %c0_i32 = arith.constant 0 : i32
    return %arg1, %arg0 : i32, i32
  }
}

</mosaic_0001>

<bundles_post_ra>
// kernel: tpu_custom_call.1
= control target key start
LH: loop header
LB: loop body
LE: loop exit
PB: predicated region body
PF: predicated region fallthrough
CT: control target
= control target key end

     0   :  { %6 = vsyncpa [#allocation3], 0  ;;  %s118_s0 = inlined_call_operand.hbm [shape: f32[8,256], index: 0, kind: input, shape index: {}]   ;;  %s119_s1 = inlined_call_operand.hbm [shape: f32[8,256], index: 1, kind: output, shape index: {}]  }
   0x1   :  { %7 = vsyncpa [#allocation4], 0  ;;  %s13_s8 = sshll.u32 %s118_s0, 4  ;;  %s100_s9 = smov [#allocation2]   ;;  %s14_s8 = int_to_ptr.hbm [resolvable:$true] %s13_s8 }
   0x2   :  { %s15_s10 = sshll.u32 %s100_s9, 4  ;;  %s16_s10 = int_to_ptr.vmem [resolvable:$true] %s15_s10 }
   0x3   :  { %18 = dma.hbm_to_vmem [thread:$0]  %s14_s8, 256, %s16_s10, [#allocation3]  }
   0x4   :  { %96 = dma.done.wait [#allocation3], 256  }
   0x5   :  { %97 = vsyncadd [#allocation3], 4294967040  ;;  %s101_s11 = smov [#allocation5]   ;;  %s36_s15 = sshll.u32 %s119_s1, 4  ;;  %v23_v0 = vld [vmem:[#allocation2] sm:$0xff]  ;;  %v24_v1 = vld [vmem:[#allocation2 + $0x8] sm:$0xff]  ;;  %s37_s15 = int_to_ptr.hbm [resolvable:$true] %s36_s15 }
   0x6   :  { %s34_s12 = sshll.u32 %s101_s11, 4  ;;  %v25_v2 = vmul.f32 0.003921569, %v23_v0  ;;  %v26_v3 = vmul.f32 0.003921569, %v24_v1  ;;  %s35_s12 = int_to_ptr.vmem [resolvable:$true] %s34_s12 }
   0x8   :  { %27 = vst [vmem:[#allocation5] sm:$0xff] %v25_v2 }
   0x9   :  { %28 = vst [vmem:[#allocation5 + $0x8] sm:$0xff] %v26_v3 }
   0xa   :  { %39 = dma.vmem_to_hbm [thread:$0]  %s35_s12, 256, %s37_s15, [#allocation4]  }
   0xb   :  { %98 = dma.done.wait [#allocation4], 256  }
   0xc   :  { %99 = vsyncadd [#allocation4], 4294967040 }
   0xd   :  { %44 = vsyncpa [#allocation3], 1 }
   0xe   :  { %45 = vsyncpa [#allocation4], 1 }

</bundles_post_ra>
